<compile_context>
chip_gen: v7x
topology: tpu7x:2x2x1
jax: 0.10.0
libtpu: 0.0.40
codegen_flags: <defaults>
</compile_context>

<pallas_src>
import numpy as np
import jax
import jax.numpy as jnp
from jax.experimental import pallas as pl
from jax.experimental.pallas import tpu as pltpu


def _pick_spatial_tile(hw, max_tile):
    """Largest multiple of 128 that divides hw and is <= max_tile, else hw."""
    if hw % 128 != 0:
        return hw
    t = (min(max_tile, hw) // 128) * 128
    while t >= 128:
        if hw % t == 0:
            return t
        t -= 128
    return hw


def _make_level_call(N, C, hw, kk, BN, T):
    """Per-pyramid-level pallas_call. Grid = (batch blocks, spatial tiles)."""
    G = hw // T
    NB = N // BN

    def kernel(logs_ref, yb_ref, out_ref):
        j = pl.program_id(1)

        # Output block index is constant along the spatial (j) axis, so the
        # block stays VMEM-resident: init once, accumulate every tile.
        @pl.when(j == 0)
        def _init():
            out_ref[...] = jnp.zeros_like(out_ref)

        logs = logs_ref[...]                     # (BN, C, T) f32 log-softmax
        pred = jnp.exp(logs)
        labels = yb_ref[...]                     # (BN, kk, T) int8/int32 labels

        # Pooled one-hot without the (C, kk, T) intermediate: running OR over
        # the kk pooling-bin elements on a (BN, C, T) working set.
        cls = jax.lax.broadcasted_iota(jnp.int32, (BN, C, T), 1)
        hit = labels[:, 0, :].astype(jnp.int32)[:, None, :] == cls
        for k in range(1, kk):                   # kk is a small static int
            hit = jnp.logical_or(
                hit, labels[:, k, :].astype(jnp.int32)[:, None, :] == cls)
        yb1h = hit.astype(jnp.float32)           # (BN, C, T) pooled one-hot

        # Fused statistics, accumulated in the resident output block:
        #   row 0: tp, row 1: y volume, row 2: pred volume, row 3: ce term.
        out_ref[0] += jnp.sum(yb1h * pred, axis=-1, keepdims=True)
        out_ref[1] += jnp.sum(yb1h, axis=-1, keepdims=True)
        out_ref[2] += jnp.sum(pred, axis=-1, keepdims=True)
        out_ref[3] += jnp.sum(yb1h * logs, axis=-1, keepdims=True)

    return pl.pallas_call(
        kernel,
        out_shape=jax.ShapeDtypeStruct((4, N, C, 1), jnp.float32),
        grid_spec=pltpu.PrefetchScalarGridSpec(
            num_scalar_prefetch=0,
            grid=(NB, G),
            in_specs=[
                pl.BlockSpec((BN, C, T), lambda b, j: (b, 0, j)),
                pl.BlockSpec((BN, kk, T), lambda b, j: (b, 0, j)),
            ],
            out_specs=pl.BlockSpec((4, BN, C, 1), lambda b, j: (0, b, 0, 0)),
        ),
        compiler_params=pltpu.CompilerParams(
            dimension_semantics=("parallel", "arbitrary")),
    )


def ce_dice_pyramid_loss(logs_list, yb, eps=1e-5, ce_weight=1.0,
                         dice_weight=1.0, pyramid_weight=0.5,
                         max_spatial_tile=2048):
    """yb: (N, 1, H, W) int labels in [0, C). logs_list: list of (N, C, h, w) log-softmax."""
    C = logs_list[0].shape[1]
    N, _, H, W = yb.shape
    ws = pyramid_weight ** np.arange(len(logs_list))
    ws = ws / np.sum(ws)

    # int8 labels (valid for C <= 127) cut full-resolution label DMA by 4x.
    lab_dtype = jnp.int8 if C <= 127 else jnp.int32

    total = jnp.float32(0.0)
    for logs, w in zip(logs_list, ws):
        n, c, h, wd = logs.shape
        assert H % h == 0 and W % wd == 0, "adaptive pool here assumes divisible sizes"
        k1, k2 = H // h, W // wd
        hw, kk = h * wd, k1 * k2

        logs_flat = logs.reshape(N, C, hw).astype(jnp.float32)
        # rearrange labels so each output pixel's pooling bin sits along dim -2
        yb_blk = (yb.reshape(N, h, k1, wd, k2)
                    .transpose(0, 2, 4, 1, 3)
                    .reshape(N, kk, hw)
                    .astype(lab_dtype))

        # Tiling policy: fold the batch for tiny (coarse) levels, otherwise
        # tile the flattened spatial axis with an accumulating grid axis.
        if hw < 512:
            BN, T = N, hw
        else:
            BN, T = 1, _pick_spatial_tile(hw, max_spatial_tile)

        stats = _make_level_call(N, C, hw, kk, BN, T)(logs_flat, yb_blk)
        tp = stats[0, :, :, 0]   # (N, C)
        yv = stats[1, :, :, 0]
        pv = stats[2, :, :, 0]
        ce = stats[3, :, :, 0]

        ce_loss = -jnp.sum(ce) / (N * hw)
        dice = (2.0 * tp[:, 1:] + eps) / (yv[:, 1:] + pv[:, 1:] + eps)
        dice_loss = -jnp.mean(dice)
        total = total + jnp.float32(w) * (ce_weight * ce_loss + dice_weight * dice_loss)
    return total


def _reference(logs_list, yb, eps=1e-5, ce_weight=1.0, dice_weight=1.0,
               pyramid_weight=0.5):
    """Pure-JAX reference mirroring the PyTorch module (mask=None path)."""
    C = logs_list[0].shape[1]
    N, _, H, W = yb.shape
    yb_oh = jnp.concatenate([(yb == c).astype(jnp.float32) for c in range(C)], axis=1)
    ws = pyramid_weight ** np.arange(len(logs_list))
    ws = ws / np.sum(ws)
    total = 0.0
    for logs, w in zip(logs_list, ws):
        n, c, h, wd = logs.shape
        k1, k2 = H // h, W // wd
        yb_ds = yb_oh.reshape(N, C, h, k1, wd, k2).max(axis=(3, 5))
        pred = jnp.exp(logs)
        ce = -jnp.mean(jnp.sum(yb_ds * logs, axis=1))
        tp = jnp.sum(yb_ds[:, 1:] * pred[:, 1:], axis=(2, 3))
        yv = jnp.sum(yb_ds[:, 1:], axis=(2, 3))
        pv = jnp.sum(pred[:, 1:], axis=(2, 3))
        dice = (2.0 * tp + eps) / (yv + pv + eps)
        total = total + float(w) * (ce_weight * ce + dice_weight * (-jnp.mean(dice)))
    return total


if __name__ == "__main__":
    master_key = jax.random.PRNGKey(0)

    def run_case(N, C, H, W, level_shapes, max_tile):
        keys = jax.random.split(master_key, len(level_shapes) + 1)
        logs_list = []
        for k, (h, w) in zip(keys[:-1], level_shapes):
            logits = jax.random.normal(k, (N, C, h, w), dtype=jnp.float32)
            logs_list.append(jax.nn.log_softmax(logits, axis=1))
        yb = jax.random.randint(keys[-1], (N, 1, H, W), 0, C, dtype=jnp.int32)

        out = jax.block_until_ready(
            ce_dice_pyramid_loss(logs_list, yb, max_spatial_tile=max_tile))
        ref = jax.block_until_ready(_reference(logs_list, yb))
        np.testing.assert_allclose(np.asarray(out), np.asarray(ref),
                                   rtol=1e-5, atol=1e-5)

    # Small case (batch-folded, single-spatial-tile path).
    run_case(2, 4, 16, 16, [(16, 16), (8, 8), (4, 4)], max_tile=2048)
    # Slightly larger case exercising the spatially tiled accumulation path
    # (hw=4096 -> two 2048-lane tiles with in-kernel accumulation).
    run_case(2, 4, 64, 64, [(64, 64), (32, 32), (16, 16)], max_tile=2048)

    print("KERNEL_OK")
</pallas_src>

<mosaic_0001>
module attributes {stable_mosaic.version = 11 : i64} {
  func.func @kernel(%arg0: i32, %arg1: i32, %arg2: memref<2x4x256xf32, #tpu.memory_space<vmem>>, %arg3: memref<2x1x256xi8, #tpu.memory_space<vmem>>, %arg4: memref<4x2x4x1xf32, #tpu.memory_space<vmem>>) attributes {dimension_semantics = [#tpu.dimension_semantics<parallel>, #tpu.dimension_semantics<arbitrary>], iteration_bounds = array<i64: 1, 1>, scalar_prefetch = 0 : i64, scratch_operands = 0 : i64, tpu.core_type = #tpu.core_type<tc>, window_params = [{transform_indices = @transform_0, window_bounds = array<i64: 2, 4, 256>}, {transform_indices = @transform_1, window_bounds = array<i64: 2, 1, 256>}, {transform_indices = @transform_2, window_bounds = array<i64: 4, 2, 4, 1>}]} {
    %c0_i32 = arith.constant 0 : i32
    %0 = arith.cmpi eq, %arg1, %c0_i32 : i32
    %1 = arith.extui %0 : i1 to i32
    %c0_i32_0 = arith.constant 0 : i32
    %2 = arith.cmpi ne, %1, %c0_i32_0 : i32
    scf.if %2 {
      %cst_38 = arith.constant 0.000000e+00 : f32
      %48 = vector.broadcast %cst_38 : f32 to vector<4x2x4x1xf32>
      %c0_39 = arith.constant 0 : index
      %c0_40 = arith.constant 0 : index
      %c0_41 = arith.constant 0 : index
      %c0_42 = arith.constant 0 : index
      %49 = vector.load %arg4[%c0_39, %c0_40, %c0_41, %c0_42] : memref<4x2x4x1xf32, #tpu.memory_space<vmem>>, vector<4x2x4x1xf32>
      tpu.vector_store %arg4[%c0_39, %c0_40, %c0_41, %c0_42], %48 {strides = array<i32>} : memref<4x2x4x1xf32, #tpu.memory_space<vmem>>, vector<4x2x4x1xf32>,
    } else {
    }
    %c0 = arith.constant 0 : index
    %c0_1 = arith.constant 0 : index
    %c0_2 = arith.constant 0 : index
    %3 = vector.load %arg2[%c0, %c0_1, %c0_2] : memref<2x4x256xf32, #tpu.memory_space<vmem>>, vector<2x4x256xf32>
    %4 = math.exp %3 : vector<2x4x256xf32>
    %c0_3 = arith.constant 0 : index
    %c0_4 = arith.constant 0 : index
    %c0_5 = arith.constant 0 : index
    %5 = vector.load %arg3[%c0_3, %c0_4, %c0_5] : memref<2x1x256xi8, #tpu.memory_space<vmem>>, vector<2x1x256xi8>
    %6 = tpu.iota {dimensions = array<i32: 1>} : vector<2x4x256xi32>
    %7 = vector.shape_cast %5 : vector<2x1x256xi8> to vector<2x256xi8>
    %8 = arith.extsi %7 : vector<2x256xi8> to vector<2x256xi32>
    %9 = vector.shape_cast %8 : vector<2x256xi32> to vector<2x1x256xi32>
    %10 = vector.broadcast %9 : vector<2x1x256xi32> to vector<2x4x256xi32>
    %11 = arith.cmpi eq, %10, %6 : vector<2x4x256xi32>
    %12 = arith.extui %11 : vector<2x4x256xi1> to vector<2x4x256xi32>
    %13 = arith.sitofp %12 : vector<2x4x256xi32> to vector<2x4x256xf32>
    %c0_6 = arith.constant 0 : index
    %c0_7 = arith.constant 0 : index
    %c0_8 = arith.constant 0 : index
    %c0_9 = arith.constant 0 : index
    %14 = vector.load %arg4[%c0_6, %c0_7, %c0_8, %c0_9] : memref<4x2x4x1xf32, #tpu.memory_space<vmem>>, vector<1x2x4x1xf32>
    %15 = vector.shape_cast %14 : vector<1x2x4x1xf32> to vector<2x4x1xf32>
    %16 = arith.mulf %13, %4 : vector<2x4x256xf32>
    %cst = arith.constant dense<0.000000e+00> : vector<2x4xf32>
    %17 = vector.multi_reduction <add>, %16, %cst [2] : vector<2x4x256xf32> to vector<2x4xf32>
    %18 = vector.shape_cast %17 : vector<2x4xf32> to vector<2x4x1xf32>
    %19 = arith.addf %15, %18 : vector<2x4x1xf32>
    %c0_10 = arith.constant 0 : index
    %c0_11 = arith.constant 0 : index
    %c0_12 = arith.constant 0 : index
    %c0_13 = arith.constant 0 : index
    %20 = vector.load %arg4[%c0_10, %c0_11, %c0_12, %c0_13] : memref<4x2x4x1xf32, #tpu.memory_space<vmem>>, vector<1x2x4x1xf32>
    %21 = vector.shape_cast %20 : vector<1x2x4x1xf32> to vector<2x4x1xf32>
    %22 = vector.shape_cast %19 : vector<2x4x1xf32> to vector<1x2x4x1xf32>
    tpu.vector_store %arg4[%c0_10, %c0_11, %c0_12, %c0_13], %22 {strides = array<i32>} : memref<4x2x4x1xf32, #tpu.memory_space<vmem>>, vector<1x2x4x1xf32>,
    %c1 = arith.constant 1 : index
    %c0_14 = arith.constant 0 : index
    %c0_15 = arith.constant 0 : index
    %c0_16 = arith.constant 0 : index
    %23 = vector.load %arg4[%c1, %c0_14, %c0_15, %c0_16] : memref<4x2x4x1xf32, #tpu.memory_space<vmem>>, vector<1x2x4x1xf32>
    %24 = vector.shape_cast %23 : vector<1x2x4x1xf32> to vector<2x4x1xf32>
    %cst_17 = arith.constant dense<0.000000e+00> : vector<2x4xf32>
    %25 = vector.multi_reduction <add>, %13, %cst_17 [2] : vector<2x4x256xf32> to vector<2x4xf32>
    %26 = vector.shape_cast %25 : vector<2x4xf32> to vector<2x4x1xf32>
    %27 = arith.addf %24, %26 : vector<2x4x1xf32>
    %c1_18 = arith.constant 1 : index
    %c0_19 = arith.constant 0 : index
    %c0_20 = arith.constant 0 : index
    %c0_21 = arith.constant 0 : index
    %28 = vector.load %arg4[%c1_18, %c0_19, %c0_20, %c0_21] : memref<4x2x4x1xf32, #tpu.memory_space<vmem>>, vector<1x2x4x1xf32>
    %29 = vector.shape_cast %28 : vector<1x2x4x1xf32> to vector<2x4x1xf32>
    %30 = vector.shape_cast %27 : vector<2x4x1xf32> to vector<1x2x4x1xf32>
    tpu.vector_store %arg4[%c1_18, %c0_19, %c0_20, %c0_21], %30 {strides = array<i32>} : memref<4x2x4x1xf32, #tpu.memory_space<vmem>>, vector<1x2x4x1xf32>,
    %c2 = arith.constant 2 : index
    %c0_22 = arith.constant 0 : index
    %c0_23 = arith.constant 0 : index
    %c0_24 = arith.constant 0 : index
    %31 = vector.load %arg4[%c2, %c0_22, %c0_23, %c0_24] : memref<4x2x4x1xf32, #tpu.memory_space<vmem>>, vector<1x2x4x1xf32>
    %32 = vector.shape_cast %31 : vector<1x2x4x1xf32> to vector<2x4x1xf32>
    %cst_25 = arith.constant dense<0.000000e+00> : vector<2x4xf32>
    %33 = vector.multi_reduction <add>, %4, %cst_25 [2] : vector<2x4x256xf32> to vector<2x4xf32>
    %34 = vector.shape_cast %33 : vector<2x4xf32> to vector<2x4x1xf32>
    %35 = arith.addf %32, %34 : vector<2x4x1xf32>
    %c2_26 = arith.constant 2 : index
    %c0_27 = arith.constant 0 : index
    %c0_28 = arith.constant 0 : index
    %c0_29 = arith.constant 0 : index
    %36 = vector.load %arg4[%c2_26, %c0_27, %c0_28, %c0_29] : memref<4x2x4x1xf32, #tpu.memory_space<vmem>>, vector<1x2x4x1xf32>
    %37 = vector.shape_cast %36 : vector<1x2x4x1xf32> to vector<2x4x1xf32>
    %38 = vector.shape_cast %35 : vector<2x4x1xf32> to vector<1x2x4x1xf32>
    tpu.vector_store %arg4[%c2_26, %c0_27, %c0_28, %c0_29], %38 {strides = array<i32>} : memref<4x2x4x1xf32, #tpu.memory_space<vmem>>, vector<1x2x4x1xf32>,
    %c3 = arith.constant 3 : index
    %c0_30 = arith.constant 0 : index
    %c0_31 = arith.constant 0 : index
    %c0_32 = arith.constant 0 : index
    %39 = vector.load %arg4[%c3, %c0_30, %c0_31, %c0_32] : memref<4x2x4x1xf32, #tpu.memory_space<vmem>>, vector<1x2x4x1xf32>
    %40 = vector.shape_cast %39 : vector<1x2x4x1xf32> to vector<2x4x1xf32>
    %41 = arith.mulf %13, %3 : vector<2x4x256xf32>
    %cst_33 = arith.constant dense<0.000000e+00> : vector<2x4xf32>
    %42 = vector.multi_reduction <add>, %41, %cst_33 [2] : vector<2x4x256xf32> to vector<2x4xf32>
    %43 = vector.shape_cast %42 : vector<2x4xf32> to vector<2x4x1xf32>
    %44 = arith.addf %40, %43 : vector<2x4x1xf32>
    %c3_34 = arith.constant 3 : index
    %c0_35 = arith.constant 0 : index
    %c0_36 = arith.constant 0 : index
    %c0_37 = arith.constant 0 : index
    %45 = vector.load %arg4[%c3_34, %c0_35, %c0_36, %c0_37] : memref<4x2x4x1xf32, #tpu.memory_space<vmem>>, vector<1x2x4x1xf32>
    %46 = vector.shape_cast %45 : vector<1x2x4x1xf32> to vector<2x4x1xf32>
    %47 = vector.shape_cast %44 : vector<2x4x1xf32> to vector<1x2x4x1xf32>
    tpu.vector_store %arg4[%c3_34, %c0_35, %c0_36, %c0_37], %47 {strides = array<i32>} : memref<4x2x4x1xf32, #tpu.memory_space<vmem>>, vector<1x2x4x1xf32>,
    return
  }
  func.func @transform_0(%arg0: i32, %arg1: i32) -> (i32, i32, i32) {
    %c0_i32 = arith.constant 0 : i32
    %c0_i32_0 = arith.constant 0 : i32
    return %arg0, %c0_i32, %arg1 : i32, i32, i32
  }
  func.func @transform_1(%arg0: i32, %arg1: i32) -> (i32, i32, i32) {
    %c0_i32 = arith.constant 0 : i32
    %c0_i32_0 = arith.constant 0 : i32
    return %arg0, %c0_i32, %arg1 : i32, i32, i32
  }
  func.func @transform_2(%arg0: i32, %arg1: i32) -> (i32, i32, i32, i32) {
    %c0_i32 = arith.constant 0 : i32
    %c0_i32_0 = arith.constant 0 : i32
    %c0_i32_1 = arith.constant 0 : i32
    %c0_i32_2 = arith.constant 0 : i32
    return %c0_i32, %arg0, %c0_i32_0, %c0_i32_1 : i32, i32, i32, i32
  }
}

</mosaic_0001>

<bundles_post_ra>
// kernel: tpu_custom_call.1
= control target key start
LH: loop header
LB: loop body
LE: loop exit
PB: predicated region body
PF: predicated region fallthrough
CT: control target
= control target key end

     0   :  { %7 = vsyncpa [#allocation3], 0  ;;  %s242_s9 = smov [#allocation2]   ;;  %s386_s0 = inlined_call_operand.hbm [shape: f32[2,4,256], index: 0, kind: input, shape index: {}]   ;;  %s387_s1 = inlined_call_operand.vmem [shape: s8[2,1,256], index: 1, kind: input, shape index: {}]   ;;  %s388_s2 = inlined_call_operand.vmem [shape: f32[4,2,4,1], index: 2, kind: output, shape index: {}]  }
   0x1   :  { %s13_s10 = sshll.u32 %s242_s9, 4  ;;  %s218_s13 = scalar_lea.hbm %s386_s0, 256  ;;  %s14_s10 = int_to_ptr.vmem [resolvable:$true] %s13_s10 }
   0x2   :  { %p219_p0 = scmp.ne.s32.totalorder %s386_s0, %s218_s13  ;;  %p222_p1 = scmp.lt.u32.totalorder %s218_s13, %s386_s0 }
   0x4   :  { %p224_p2 = pnand %p222_p1, %p219_p0 }
   0x6   :  { %227 = shalt.err (!%p224_p2)
}
   0x7   :  { %s228_s18 = scalar_lea.vmem %s14_s10, 256  ;;  %p233_p4 = scmp.lt.s32.totalorder %s14_s10, %s14_s10 }
   0x8   :  { %p229_p3 = scmp.ne.s32.totalorder %s14_s10, %s228_s18  ;;  %p234_p5 = scmp.lt.s32.totalorder %s228_s18, %s228_s18 }
   0xa   :  { %p235_p6 = por %p234_p5, %p233_p4 }
   0xc   :  { %p236_p7 = pnand %p235_p6, %p229_p3 }
   0xe   :  { %239 = shalt.err (!%p236_p7)
}
   0xf   :  { %s243_s19 = smov 128   ;;  %s244_s20 = smov 8  }
  0x10   :  { %19 = dma.hbm_to_vmem [thread:$0]  %s386_s0, 256, %s14_s10, [#allocation3], %s243_s19, %s243_s19, %s244_s20  }
  0x11   :  { %240 = dma.done.wait [#allocation3], 256  }
  0x12   :  { %241 = vsyncadd [#allocation3], 4294967040  ;;  %v46_v0 = vlaneseq  ;;  %vm29_vm0 = vcmask 3072   ;;  %v245_v1 = vmov 0.0   ;;  %v205_v5 = vld [vmem:[%s387_s1] sm:$0xf]  }
  0x13   :  { %32 = vst.msk [vmem:[%s388_s2 + $0x8] sm:$0xf] %vm29_vm0, %v245_v1  ;;  %30 = vst.msk [vmem:[%s388_s2] sm:$0xf] %vm29_vm0, %v245_v1  ;;  %v308_v6 = vld [vmem:[#allocation2] sm:$0xff]  ;;  %v39_v7 = vld [vmem:[#allocation2 + $0x8] sm:$0xff]  ;;  %v206_v8 = vunpack.c.0.s8 %v205_v5  ;;  %v207_v10 = vunpack.c.1.s8 %v205_v5 }
  0x14   :  { %31 = vst.msk [vmem:[%s388_s2 + $0x4] sm:$0xf] %vm29_vm0, %v245_v1  ;;  %33 = vst.msk [vmem:[%s388_s2 + $0xc] sm:$0xf] %vm29_vm0, %v245_v1  ;;  %v47_v2 = vshrl.u32 %v46_v0, 7  ;;  %vm106_vm1 = vcmask 1043456   ;;  %v162_v20 = vcombine.high %v39_v7, %v39_v7  ;;  %v161_v41 = vcombine.high %v308_v6, %v308_v6 }
  0x15   :  { %34 = vst.msk [vmem:[%s388_s2 + $0x10] sm:$0xf] %vm29_vm0, %v245_v1  ;;  %35 = vst.msk [vmem:[%s388_s2 + $0x14] sm:$0xf] %vm29_vm0, %v245_v1  ;;  %v40_v9 = vmul.f32 1.442695, %v308_v6 }
  0x16   :  { %36 = vst.msk [vmem:[%s388_s2 + $0x18] sm:$0xf] %vm29_vm0, %v245_v1  ;;  %37 = vst.msk [vmem:[%s388_s2 + $0x1c] sm:$0xf] %vm29_vm0, %v245_v1  ;;  %v52_v3 = vsub.s32 0, %v47_v2  ;;  %v56_v4 = vsub.s32 4, %v47_v2 }
  0x17   :  { %v42_v11 = vmul.f32 1.442695, %v39_v7  ;;  %214 = vpow2.f32 %v40_v9 }
  0x18   :  { %v53_v12 = vrot.slane %v206_v8, %v52_v3  ;;  %v57_v13 = vrot.slane %v206_v8, %v56_v4  ;;  %v61_v14 = vrot.slane %v207_v10, %v52_v3  ;;  %v65_v15 = vrot.slane %v207_v10, %v56_v4 }
  0x19   :  { %216 = vpow2.f32 %v42_v11 }
  0x1a   :  { %v69_v16 = vrot.slane %v53_v12, %v52_v3  ;;  %v73_v17 = vrot.slane %v57_v13, %v52_v3  ;;  %v77_v18 = vrot.slane %v61_v14, %v52_v3  ;;  %v81_v19 = vrot.slane %v65_v15, %v52_v3  ;;  %v192_v62 = vld [vmem:[%s388_s2 + $0x8] sm:$0xf]  ;;  %v94_v9 = vld [vmem:[%s388_s2] sm:$0xf] }
  0x1b   :  { %v95_v15 = vld [vmem:[%s388_s2 + $0x4] sm:$0xf] }
  0x1c   :  { %vm82_vm2 = vcmp.eq.s32.totalorder %v69_v16, %v47_v2  ;;  %vm83_vm3 = vcmp.eq.s32.totalorder %v73_v17, %v47_v2  ;;  %vm84_vm4 = vcmp.eq.s32.totalorder %v77_v18, %v47_v2  ;;  %vm85_vm5 = vcmp.eq.s32.totalorder %v81_v19, %v47_v2  ;;  %v196_v3 = vld [vmem:[%s388_s2 + $0x10] sm:$0xf]  ;;  %v197_v5 = vld [vmem:[%s388_s2 + $0x14] sm:$0xf] }
  0x1d   :  { %v188_v21 = vsel %vm82_vm2, 1.0, %v245_v1  ;;  %v189_v22 = vsel %vm83_vm3, 1.0, %v245_v1  ;;  %v190_v23 = vsel %vm84_vm4, 1.0, %v245_v1  ;;  %v191_v26 = vsel %vm85_vm5, 1.0, %v245_v1  ;;  %v193_v1 = vld [vmem:[%s388_s2 + $0xc] sm:$0xf] }
  0x1e   :  { %v125_v24 = vsel %vm106_vm1, %v188_v21, 0.0  ;;  %v126_v25 = vsel %vm106_vm1, %v189_v22, 0.0  ;;  %v130_v27 = vsel %vm106_vm1, %v190_v23, 0.0  ;;  %v131_v29 = vsel %vm106_vm1, %v191_v26, 0.0  ;;  %v201_v11 = vld [vmem:[%s388_s2 + $0x1c] sm:$0xf] }
  0x1f   :  { %v127_v28 = vadd.f32 %v126_v25, %v125_v24  ;;  %v167_v30 = vmul.f32 %v190_v23, %v39_v7  ;;  %v132_v31 = vadd.f32 %v131_v29, %v130_v27  ;;  %v168_v33 = vmul.f32 %v191_v26, %v162_v20  ;;  %v200_v19 = vld [vmem:[%s388_s2 + $0x18] sm:$0xf] }
  0x20   :  { %v165_v53 = vmul.f32 %v188_v21, %v308_v6  ;;  %v166_v57 = vmul.f32 %v189_v22, %v161_v41 }
  0x21   :  { %128 = vadd.xlane.f32.xlu1 %v127_v28  ;;  %v215_v32 = vpop.eup %214  ;;  %v174_v40 = vsel %vm106_vm1, %v167_v30, 0.0  ;;  %v175_v49 = vsel %vm106_vm1, %v168_v33, 0.0 }
  0x22   :  { %v98_v35 = vcombine.high %v215_v32, %v215_v32  ;;  %v142_v36 = vsel %vm106_vm1, %v215_v32, 0.0  ;;  %v102_v37 = vmul.f32 %v215_v32, %v188_v21  ;;  %v176_v56 = vadd.f32 %v175_v49, %v174_v40 }
  0x23   :  { %v217_v34 = vpop.eup %216  ;;  %v169_v59 = vsel %vm106_vm1, %v165_v53, 0.0  ;;  %v170_v60 = vsel %vm106_vm1, %v166_v57, 0.0 }
  0x24   :  { %v99_v38 = vcombine.high %v217_v34, %v217_v34  ;;  %v147_v39 = vsel %vm106_vm1, %v217_v34, 0.0  ;;  %v143_v42 = vsel %vm106_vm1, %v98_v35, 0.0  ;;  %v103_v43 = vmul.f32 %v189_v22, %v98_v35 }
  0x25   :  { %133 = vadd.xlane.f32.xlu1 %v132_v31  ;;  %v107_v44 = vsel %vm106_vm1, %v102_v37, 0.0  ;;  %v104_v45 = vmul.f32 %v217_v34, %v190_v23  ;;  %v144_v46 = vadd.f32 %v143_v42, %v142_v36  ;;  %v171_v61 = vadd.f32 %v170_v60, %v169_v59 }
  0x26   :  { %v148_v47 = vsel %vm106_vm1, %v99_v38, 0.0  ;;  %v105_v48 = vmul.f32 %v191_v26, %v99_v38  ;;  %v108_v50 = vsel %vm106_vm1, %v103_v43, 0.0 }
  0x27   :  { %v149_v51 = vadd.f32 %v148_v47, %v147_v39  ;;  %145 = vadd.xlane.f32.xlu0 %v144_v46  ;;  %v109_v52 = vadd.f32 %v108_v50, %v107_v44  ;;  %v112_v54 = vsel %vm106_vm1, %v104_v45, 0.0 }
  0x28   :  { %v113_v55 = vsel %vm106_vm1, %v105_v48, 0.0 }
  0x29   :  { %150 = vadd.xlane.f32.xlu1 %v149_v51  ;;  %v114_v58 = vadd.f32 %v113_v55, %v112_v54 }
  0x2b   :  { %110 = vadd.xlane.f32.xlu0 %v109_v52 }
  0x2d   :  { %177 = vadd.xlane.f32.xlu1 %v176_v56 }
  0x2f   :  { %115 = vadd.xlane.f32.xlu0 %v114_v58 }
  0x33   :  { %172 = vadd.xlane.f32.xlu0 %v171_v61 }
  0xae   :  { %v129_v63 = vpop.xlane.xlu1 %128 }
  0xaf   :  { %v135_v0 = vadd.f32 %v192_v62, %v129_v63 }
  0xb1   :  { %194 = vst.msk [vmem:[%s388_s2 + $0x8] sm:$0xf] %vm29_vm0, %v135_v0 }
  0xb2   :  { %v134_v2 = vpop.xlane.xlu1 %133 }
  0xb3   :  { %v136_v4 = vadd.f32 %v193_v1, %v134_v2 }
  0xb4   :  { %v146_v6 = vpop.xlane.xlu0 %145 }
  0xb5   :  { %195 = vst.msk [vmem:[%s388_s2 + $0xc] sm:$0xf] %vm29_vm0, %v136_v4  ;;  %v152_v7 = vadd.f32 %v196_v3, %v146_v6 }
  0xb6   :  { %v151_v8 = vpop.xlane.xlu1 %150 }
  0xb7   :  { %v153_v10 = vadd.f32 %v197_v5, %v151_v8  ;;  %198 = vst.msk [vmem:[%s388_s2 + $0x10] sm:$0xf] %vm29_vm0, %v152_v7 }
  0xb8   :  { %v111_v12 = vpop.xlane.xlu0 %110 }
  0xb9   :  { %199 = vst.msk [vmem:[%s388_s2 + $0x14] sm:$0xf] %vm29_vm0, %v153_v10  ;;  %v117_v13 = vadd.f32 %v111_v12, %v94_v9 }
  0xba   :  { %v178_v14 = vpop.xlane.xlu1 %177 }
  0xbb   :  { %v180_v16 = vadd.f32 %v201_v11, %v178_v14  ;;  %120 = vst.msk [vmem:[%s388_s2] sm:$0xf] %vm29_vm0, %v117_v13 }
  0xbc   :  { %v116_v17 = vpop.xlane.xlu0 %115 }
  0xbd   :  { %203 = vst.msk [vmem:[%s388_s2 + $0x1c] sm:$0xf] %vm29_vm0, %v180_v16  ;;  %v118_v18 = vadd.f32 %v116_v17, %v95_v15 }
  0xbf   :  { %121 = vst.msk [vmem:[%s388_s2 + $0x4] sm:$0xf] %vm29_vm0, %v118_v18 }
  0xc0   :  { %v173_v20 = vpop.xlane.xlu0 %172 }
  0xc1   :  { %v179_v21 = vadd.f32 %v200_v19, %v173_v20 }
  0xc3   :  { %202 = vst.msk [vmem:[%s388_s2 + $0x18] sm:$0xf] %vm29_vm0, %v179_v21 }
  0xc4   :  { %187 = vsyncpa [#allocation3], 1 }

</bundles_post_ra>
